<compile_context>
chip_gen: v7x
topology: tpu7x:2x2x1
jax: 0.10.0
libtpu: 0.0.40
codegen_flags: <defaults>
</compile_context>

<pallas_src>
import functools

import jax
import jax.numpy as jnp
from jax.experimental import pallas as pl
from jax.experimental.pallas import tpu as pltpu


def _sparse_linear_kernel(x_ref, w_ref, b_ref, o_ref, *, hblk, in_dim, out_dim,
                          compute_dtype):
    # x_ref: (tb, hblk*in_dim)        this head-block / batch-tile input slab (HBM dtype)
    # w_ref: (hblk, in_dim, out_dim)  this head-block's weights (HBM dtype)
    # b_ref: (1, hblk*out_dim)        this head-block's bias slab (f32, resident across batch tiles)
    # o_ref: (tb, hblk*out_dim)       output slab (f32)

    def one_head_static(h):
        xh = x_ref[:, h * in_dim:(h + 1) * in_dim]
        wh = w_ref[h]
        acc = jnp.dot(xh.astype(compute_dtype), wh.astype(compute_dtype),
                      preferred_element_type=jnp.float32)
        bh = b_ref[:, h * out_dim:(h + 1) * out_dim]
        o_ref[:, h * out_dim:(h + 1) * out_dim] = (acc + bh).astype(o_ref.dtype)

    if hblk <= 8:
        # Small head blocks: full static unroll -> back-to-back MXU pushes.
        for h in range(hblk):
            one_head_static(h)
    else:
        # Large head blocks: fori_loop keeps code size / vreg live ranges bounded.
        def body(h, carry):
            x_start = pl.multiple_of(h * in_dim, 128)
            o_start = pl.multiple_of(h * out_dim, 128)
            xh = x_ref[:, pl.ds(x_start, in_dim)]
            wh = w_ref[h]
            acc = jnp.dot(xh.astype(compute_dtype), wh.astype(compute_dtype),
                          preferred_element_type=jnp.float32)
            bh = b_ref[:, pl.ds(o_start, out_dim)]
            o_ref[:, pl.ds(o_start, out_dim)] = (acc + bh).astype(o_ref.dtype)
            return carry

        jax.lax.fori_loop(0, hblk, body, 0, unroll=min(4, hblk))


def _vmem_config():
    """Generation-aware VMEM budget / scoped limit and TensorCore count heuristic."""
    try:
        cap = int(pltpu.get_tpu_info().vmem_capacity_bytes)
    except Exception:
        cap = 64 * 1024 * 1024  # conservative fallback (v7x-class)
    # v7x-class: 64 MiB VMEM per TC, 2 TCs/chip.  v5e/v6e: 128 MiB, 1 TC/chip.
    two_cores = cap <= 64 * 1024 * 1024
    if two_cores:
        vmem_limit = 32 * 1024 * 1024
        vmem_budget = 24 * 1024 * 1024
    else:
        vmem_limit = 96 * 1024 * 1024
        vmem_budget = 80 * 1024 * 1024
    return two_cores, vmem_limit, vmem_budget


def _pick_batch_tile(batch, max_tile=256):
    """Batch tile for the innermost grid axis (fills MXU M for large B)."""
    if batch <= max_tile:
        return batch                      # full array dim: always a legal block shape
    for tb in range(max_tile, 7, -1):     # need tb % 8 == 0 (f32 sublane tiling)
        if batch % tb == 0 and tb % 8 == 0:
            return tb
    # No suitable divisor (e.g. prime batch): use the full batch; the hblk chooser
    # accounts for the resulting tile size so VMEM stays within budget.
    return batch


def _pick_hblk(heads, tb, in_dim, out_dim, x_bytes, w_bytes, o_bytes,
               vmem_budget_bytes, two_cores):
    """Largest head-block that divides H, fits the double-buffered VMEM budget, and
    (on 2-TC parts only) leaves an even number (>=2) of head-axis grid steps."""

    def step_bytes(hblk):
        return 2 * (hblk * in_dim * out_dim * w_bytes       # weight tile
                    + tb * hblk * in_dim * x_bytes           # x tile
                    + tb * hblk * out_dim * o_bytes          # out tile
                    + hblk * out_dim * 4)                    # bias slab (f32)

    divisors = [d for d in range(1, heads + 1) if heads % d == 0]
    fitting = [d for d in divisors if step_bytes(d) <= vmem_budget_bytes] or [1]

    if not two_cores:
        # Single TensorCore: one big step beats many small ones (no parallelism gain
        # from splitting, ~0.35 us/step overhead otherwise).
        return max(fitting)

    # Two TensorCores: prefer an even head-axis grid so both cores get equal work.
    even = [d for d in fitting if (heads // d) >= 2 and (heads // d) % 2 == 0]
    if even:
        return max(even)
    multi = [d for d in fitting if (heads // d) >= 2]
    if multi:
        return max(multi)
    return max(fitting)


def sparse_linear(x, weight, bias=None, *, compute_dtype=jnp.bfloat16):
    """x: (B, full_in); weight: (H, in_dim, out_dim); bias: (full_out,) or None.

    Contract: the per-head matmul runs on the MXU in `compute_dtype` (bf16 default,
    cast in-kernel) with f32 accumulation; bias add and output are in x.dtype.
    Numerics match the f32 PyTorch module to within bf16 rounding."""
    B, full_in = x.shape
    H, in_dim, out_dim = weight.shape
    assert full_in == H * in_dim, "x feature dim must equal heads * in_dim"
    assert in_dim % 128 == 0 and out_dim % 128 == 0, (
        "per-head in_dim/out_dim must be multiples of 128 (TPU lane tiling); "
        "pad the model dims or add a padding path")
    full_out = H * out_dim
    out_dtype = x.dtype

    if bias is None:
        bias = jnp.zeros((full_out,), dtype=jnp.float32)
    bias2d = bias.reshape(1, full_out).astype(jnp.float32)

    two_cores, vmem_limit, vmem_budget = _vmem_config()
    tb = _pick_batch_tile(B)
    hblk = _pick_hblk(H, tb, in_dim, out_dim,
                      jnp.dtype(x.dtype).itemsize,
                      jnp.dtype(weight.dtype).itemsize,
                      jnp.dtype(out_dtype).itemsize,
                      vmem_budget, two_cores)
    grid = (H // hblk, B // tb)  # head-blocks (parallel) x batch tiles (arbitrary)

    kernel = functools.partial(_sparse_linear_kernel,
                               hblk=hblk, in_dim=in_dim, out_dim=out_dim,
                               compute_dtype=compute_dtype)

    return pl.pallas_call(
        kernel,
        out_shape=jax.ShapeDtypeStruct((B, full_out), out_dtype),
        grid_spec=pl.GridSpec(
            grid=grid,
            in_specs=[
                # x: this batch tile, contiguous slab of hblk head slices
                pl.BlockSpec((tb, hblk * in_dim), lambda g, b: (b, g)),
                # weights: depend only on the head-block axis -> stay resident
                # (no re-DMA) across consecutive batch-tile steps
                pl.BlockSpec((hblk, in_dim, out_dim), lambda g, b: (g, 0, 0)),
                # bias slab: also ignores the batch axis -> fetched once per head-block
                pl.BlockSpec((1, hblk * out_dim), lambda g, b: (0, g)),
            ],
            out_specs=pl.BlockSpec((tb, hblk * out_dim), lambda g, b: (b, g)),
        ),
        compiler_params=pltpu.CompilerParams(
            dimension_semantics=("parallel", "arbitrary"),
            vmem_limit_bytes=vmem_limit,
        ),
    )(x, weight, bias2d)


def init_params(key, full_in, full_out, heads):
    """Deterministic synthetic init (kaiming-uniform-like scaling per head)."""
    in_dim = full_in // heads
    out_dim = full_out // heads
    bound = float(jnp.sqrt(2.0) * jnp.sqrt(3.0 / in_dim))  # relu gain
    weight = jax.random.uniform(
        key, (heads, in_dim, out_dim), dtype=jnp.float32, minval=-bound, maxval=bound
    )
    bias = jnp.zeros((full_out,), dtype=jnp.float32)  # AddBias inits to zeros
    return weight, bias


if __name__ == "__main__":
    def run_case(batch, heads, in_dim, out_dim, key):
        full_in, full_out = heads * in_dim, heads * out_dim
        kx, kw = jax.random.split(key)
        x = jax.random.normal(kx, (batch, full_in), dtype=jnp.float32)
        weight, bias = init_params(kw, full_in, full_out, heads)
        # nonzero bias so the bias-add path is exercised
        bias = bias + 0.1 * jnp.arange(full_out, dtype=jnp.float32) / full_out

        out = jax.block_until_ready(sparse_linear(x, weight, bias))
        assert out.shape == (batch, full_out) and out.dtype == jnp.float32

        # Reference 1: exact math on the same bf16-rounded operands (f32 accumulate).
        xb = x.astype(jnp.bfloat16).astype(jnp.float32).reshape(batch, heads, in_dim)
        wb = weight.astype(jnp.bfloat16).astype(jnp.float32)
        ref_bf = jnp.einsum("bhd,hdl->bhl", xb, wb,
                            precision=jax.lax.Precision.HIGHEST
                            ).reshape(batch, full_out) + bias
        assert jnp.allclose(out, ref_bf, atol=1e-3, rtol=1e-3), "mismatch vs bf16 ref"

        # Reference 2: original full-f32 module semantics (within bf16 rounding error).
        ref32 = jnp.einsum("bhd,hdl->bhl", x.reshape(batch, heads, in_dim), weight,
                           precision=jax.lax.Precision.HIGHEST
                           ).reshape(batch, full_out) + bias
        assert jnp.allclose(out, ref32, atol=5e-2, rtol=5e-2), "mismatch vs f32 ref"

    key = jax.random.PRNGKey(0)
    k1, k2 = jax.random.split(key)
    # Case 1: small head count -> static-unroll path (hblk <= 8).
    run_case(batch=8, heads=4, in_dim=128, out_dim=128, key=k1)
    # Case 2: larger head count -> exercises the fori_loop path (hblk > 8 on all gens).
    run_case(batch=8, heads=32, in_dim=128, out_dim=128, key=k2)

    print("KERNEL_OK")
</pallas_src>

<mosaic_0001>
module attributes {stable_mosaic.version = 11 : i64} {
  func.func @_sparse_linear_kernel(%arg0: i32, %arg1: i32, %arg2: memref<8x256xf32, #tpu.memory_space<vmem>>, %arg3: memref<2x128x128xf32, #tpu.memory_space<vmem>>, %arg4: memref<1x256xf32, #tpu.memory_space<vmem>>, %arg5: memref<8x256xf32, #tpu.memory_space<vmem>>) attributes {dimension_semantics = [#tpu.dimension_semantics<parallel>, #tpu.dimension_semantics<arbitrary>], iteration_bounds = array<i64: 2, 1>, scalar_prefetch = 0 : i64, scratch_operands = 0 : i64, tpu.core_type = #tpu.core_type<tc>, window_params = [{transform_indices = @transform_0, window_bounds = array<i64: 8, 256>}, {transform_indices = @transform_1, window_bounds = array<i64: 2, 128, 128>}, {transform_indices = @transform_2, window_bounds = array<i64: 1, 256>}, {transform_indices = @transform_3, window_bounds = array<i64: 8, 256>}]} {
    %c0 = arith.constant 0 : index
    %c0_0 = arith.constant 0 : index
    %0 = vector.load %arg2[%c0, %c0_0] : memref<8x256xf32, #tpu.memory_space<vmem>>, vector<8x128xf32>
    %c0_1 = arith.constant 0 : index
    %c0_2 = arith.constant 0 : index
    %c0_3 = arith.constant 0 : index
    %1 = vector.load %arg3[%c0_1, %c0_2, %c0_3] : memref<2x128x128xf32, #tpu.memory_space<vmem>>, vector<1x128x128xf32>
    %2 = vector.shape_cast %1 : vector<1x128x128xf32> to vector<128x128xf32>
    %3 = arith.truncf %0 : vector<8x128xf32> to vector<8x128xbf16>
    %4 = arith.truncf %2 : vector<128x128xf32> to vector<128x128xbf16>
    %cst = arith.constant dense<0.000000e+00> : vector<8x128xf32>
    %5 = tpu.matmul %3, %4, %cst {dimension_numbers = #tpu.dot_dimension_numbers<[1], [0], [0], [1], [0, 0, 1, 1], [], []>} : vector<8x128xbf16>, vector<128x128xbf16>, vector<8x128xf32> -> vector<8x128xf32>
    %c0_4 = arith.constant 0 : index
    %c0_5 = arith.constant 0 : index
    %6 = vector.load %arg4[%c0_4, %c0_5] : memref<1x256xf32, #tpu.memory_space<vmem>>, vector<1x128xf32>
    %7 = vector.broadcast %6 : vector<1x128xf32> to vector<8x128xf32>
    %8 = arith.addf %5, %7 : vector<8x128xf32>
    %c0_6 = arith.constant 0 : index
    %c0_7 = arith.constant 0 : index
    %9 = vector.load %arg5[%c0_6, %c0_7] : memref<8x256xf32, #tpu.memory_space<vmem>>, vector<8x128xf32>
    tpu.vector_store %arg5[%c0_6, %c0_7], %8 {strides = array<i32>} : memref<8x256xf32, #tpu.memory_space<vmem>>, vector<8x128xf32>,
    %c0_8 = arith.constant 0 : index
    %c128 = arith.constant 128 : index
    %10 = vector.load %arg2[%c0_8, %c128] : memref<8x256xf32, #tpu.memory_space<vmem>>, vector<8x128xf32>
    %c1 = arith.constant 1 : index
    %c0_9 = arith.constant 0 : index
    %c0_10 = arith.constant 0 : index
    %11 = vector.load %arg3[%c1, %c0_9, %c0_10] : memref<2x128x128xf32, #tpu.memory_space<vmem>>, vector<1x128x128xf32>
    %12 = vector.shape_cast %11 : vector<1x128x128xf32> to vector<128x128xf32>
    %13 = arith.truncf %10 : vector<8x128xf32> to vector<8x128xbf16>
    %14 = arith.truncf %12 : vector<128x128xf32> to vector<128x128xbf16>
    %cst_11 = arith.constant dense<0.000000e+00> : vector<8x128xf32>
    %15 = tpu.matmul %13, %14, %cst_11 {dimension_numbers = #tpu.dot_dimension_numbers<[1], [0], [0], [1], [0, 0, 1, 1], [], []>} : vector<8x128xbf16>, vector<128x128xbf16>, vector<8x128xf32> -> vector<8x128xf32>
    %c0_12 = arith.constant 0 : index
    %c128_13 = arith.constant 128 : index
    %16 = vector.load %arg4[%c0_12, %c128_13] : memref<1x256xf32, #tpu.memory_space<vmem>>, vector<1x128xf32>
    %17 = vector.broadcast %16 : vector<1x128xf32> to vector<8x128xf32>
    %18 = arith.addf %15, %17 : vector<8x128xf32>
    %c0_14 = arith.constant 0 : index
    %c128_15 = arith.constant 128 : index
    %19 = vector.load %arg5[%c0_14, %c128_15] : memref<8x256xf32, #tpu.memory_space<vmem>>, vector<8x128xf32>
    tpu.vector_store %arg5[%c0_14, %c128_15], %18 {strides = array<i32>} : memref<8x256xf32, #tpu.memory_space<vmem>>, vector<8x128xf32>,
    return
  }
  func.func @transform_0(%arg0: i32, %arg1: i32) -> (i32, i32) {
    %c0_i32 = arith.constant 0 : i32
    return %arg1, %arg0 : i32, i32
  }
  func.func @transform_1(%arg0: i32, %arg1: i32) -> (i32, i32, i32) {
    %c0_i32 = arith.constant 0 : i32
    %c0_i32_0 = arith.constant 0 : i32
    %c0_i32_1 = arith.constant 0 : i32
    return %arg0, %c0_i32, %c0_i32_0 : i32, i32, i32
  }
  func.func @transform_2(%arg0: i32, %arg1: i32) -> (i32, i32) {
    %c0_i32 = arith.constant 0 : i32
    %c0_i32_0 = arith.constant 0 : i32
    return %c0_i32, %arg0 : i32, i32
  }
  func.func @transform_3(%arg0: i32, %arg1: i32) -> (i32, i32) {
    %c0_i32 = arith.constant 0 : i32
    return %arg1, %arg0 : i32, i32
  }
}

</mosaic_0001>

<bundles_post_ra>
// kernel: tpu_custom_call.1
= control target key start
LH: loop header
LB: loop body
LE: loop exit
PB: predicated region body
PF: predicated region fallthrough
CT: control target
= control target key end

     0   :  { %8 = vsyncpa [#allocation3], 0  ;;  %s1185_s0 = inlined_call_operand.hbm [shape: f32[8,512], index: 0, kind: input, shape index: {}]   ;;  %s1186_s1 = inlined_call_operand.hbm [shape: f32[4,128,128], index: 1, kind: input, shape index: {}]   ;;  %s1187_s2 = inlined_call_operand.vmem [shape: f32[1,512], index: 2, kind: input, shape index: {}]   ;;  %s1188_s3 = inlined_call_operand.hbm [shape: f32[8,512], index: 3, kind: output, shape index: {}]  }
   0x1   :  { %10 = vsyncpa [#allocation3 + $0x1], 0 }
   0x2   :  { %11 = vsyncpa [#allocation6], 0 }
   0x3   :  { %13 = vsyncpa [#allocation6 + $0x1], 0 }
   0x4   :  { %14 = vsyncpa [#allocation4], 0 }
   0x5   :  { %16 = vsyncpa [#allocation4 + $0x1], 0  ;;  %s898_s12 = smov 0   ;;  %s900_s13 = smov 0  }
   0x6   :  { %s902_s14 = smov 0   ;;  %s904_s15 = smov 0  }
   0x7   :  { %s906_s16 = smov 0   ;;  %s908_s17 = smov 0  }
   0x8 LB: > { %s551_s18 = sadd.s32 4294967295, %s869_s17   ;;  %s552_s19 = sadd.s32 4294967294, %s869_s17   ;;  %s869_s17 = sphi %s908_s17, %s22_s17   ;;  %s865_s16 = sphi %s906_s16, %s1207_s16   ;;  %s861_s15 = sphi %s904_s15, %s1206_s15   ;;  %s857_s14 = sphi %s902_s14, %s1205_s14   ;;  %s853_s13 = sphi %s900_s13, %s1204_s13   ;;  %s849_s12 = sphi %s898_s12, %s1203_s12  }
   0x9   : > { %s34_s20 = sadd.s32 1, %s865_s16  ;;  %s43_s21 = sadd.s32 1, %s857_s14 }
   0xa   : > { %p36_p0 = scmp.ge.s32.totalorder %s34_s20, 2  ;;  %p50_p1 = scmp.ne.s32.totalorder %s857_s14, %s853_s13 }
   0xb   : > { %p51_p2 = scmp.eq.s32.totalorder %s869_s17, 0  ;;  %p56_p3 = scmp.ne.s32.totalorder %s853_s13, %s849_s12 }
   0xc   : > { %s1209_s20 = smov (%p36_p0, %s34_s20), 0  ;;  %p57_p5 = scmp.eq.s32.totalorder %s551_s18, 0 }
   0xd   : > { %p939_p4 = por %p51_p2, %p50_p1  ;;  %s39_s23 = ssub.s32 %s865_s16, %s1209_s20 }
   0xe   : > { %p134_p6 = scmp.eq.s32.totalorder %s551_s18, 1  ;;  %p41_p7 = scmp.eq.s32.totalorder %s39_s23, 0 }
   0xf   : > { %p945_p8 = por %p57_p5, %p56_p3  ;;  %p140_p10 = scmp.eq.s32.totalorder %s552_s19, 1 }
  0x10   : > { %p949_p9 = por %p134_p6, %p50_p1  ;;  %p669_p13 = scmp.lt.s32.totalorder %s869_s17, 2 }
  0x11   : > { %s1192_s24 = scalar_select %p945_p8, 1, 0 }
  0x12   : > { %s1193_s25 = scalar_select %p949_p9, 1, 0 }
  0x13   : > { %s954_s26 = scalar_select %p41_p7, %s857_s14, %s43_s21  }
  0x14   : > { %p956_p11 = por %p140_p10, %p56_p3  ;;  %s963_s28 = sand.u32 1, %s857_s14  }
  0x15   : > { %s555_s29 = sshll.u32 %s963_s28, 4  ;;  %s590_s30 = sshll.u32 %s865_s16, 8 }
  0x16   : > { %s1194_s27 = scalar_select %p956_p11, 1, 0 }
  0x17   : > { %s970_s6 = scalar_lea.hbm %s1185_s0, %s590_s30  ;;  %s164_s7 = scalar_lea.vmem [#allocation2], %s555_s29 }
  0x18   : > { %s174_s8 = sshll.u32 %s164_s7, 4  ;;  %p976_p0 = pnand %p669_p13, %p939_p4  ;;  %s972_s8 = int_to_ptr.vmem [resolvable:$true] %s174_s8 }
  0x19   : > { %s161_s10 = scalar_lea.sflag [#allocation3], %s963_s28  ;;  %s723_s11 = scalar_lea.hbm %s970_s6, 256 }
  0x1a   : > { %p724_p3 = scmp.ne.s32.totalorder %s970_s6, %s723_s11  ;;  %p725_p5 = pneg %p976_p0 }
  0x1b   : > { %s728_s21 = scalar_lea.hbm %s1185_s0, 512  ;;  %p729_p4 = scmp.lt.u32.totalorder %s970_s6, %s1185_s0 }
  0x1c   : > { %p726_p6 = pnand %p725_p5, %p724_p3  ;;  %p730_p10 = scmp.lt.u32.totalorder %s728_s21, %s723_s11 }
  0x1d   : > { %p732_p12 = scmp.lt.u32.totalorder %s723_s11, %s970_s6 }
  0x1e   : > { %p727_p7 = pneg %p726_p6  ;;  %p731_p13 = por %p730_p10, %p729_p4 }
  0x20   : > { %p733_p1 = por %p732_p12, %p731_p13 }
  0x22   : > { %p734_p2 = pnand %p733_p1, %p727_p7 }
  0x24   : > { %737 = shalt.err (!%p734_p2)
}
  0x25   : > { %s738_s29 = scalar_lea.vmem %s972_s8, 256  ;;  %s871_s30 = smov [#allocation2]  }
  0x26   : > { %p739_p3 = scmp.ne.s32.totalorder %s972_s8, %s738_s29  ;;  %s743_s4 = sshll.u32 %s871_s30, 4  ;;  %s744_s4 = int_to_ptr.vmem [resolvable:$false] %s743_s4 }
  0x27   : > { %s745_s5 = scalar_lea.vmem %s744_s4, 512  ;;  %p746_p9 = scmp.lt.s32.totalorder %s972_s8, %s744_s4 }
  0x28   : > { %p741_p6 = pnand %p739_p3, %p725_p5  ;;  %p747_p4 = scmp.lt.s32.totalorder %s745_s5, %s738_s29 }
  0x2a   : > { %p742_p11 = pneg %p741_p6  ;;  %p748_p10 = por %p747_p4, %p746_p9 }
  0x2c   : > { %p749_p12 = pnand %p748_p10, %p742_p11 }
  0x2e   : > { %752 = shalt.err (!%p749_p12)
}
  0x2f   : > { %661 = dma.hbm_to_vmem [thread:$0]  (!%p976_p0), %s970_s6, 256, %s972_s8, %s161_s10  }
  0x30   : > { %p1196_p1 = scmp.lt.s32.totalorder %s869_s17, 3  ;;  %p1197_p2 = scmp.ge.s32.totalorder %s869_s17, 1 }
  0x31   : > { %s558_s11 = sshll.u32 %s963_s28, 8  ;;  %s592_s18 = sshll.u32 %s865_s16, 12 }
  0x32   : > { %p1012_p7 = pnand %p1197_p2, %p1196_p1  ;;  %s1021_s22 = scalar_lea.hbm %s1186_s1, %s592_s18 }
  0x33   : > { %s185_s23 = scalar_lea.vmem [#allocation5], %s558_s11  ;;  %s182_s6 = scalar_lea.sflag [#allocation6], %s963_s28 }
  0x34   : > { %s193_s29 = sshll.u32 %s185_s23, 4  ;;  %s753_s8 = scalar_lea.hbm %s1021_s22, 4096  ;;  %s1023_s29 = int_to_ptr.vmem [resolvable:$true] %s193_s29 }
  0x35   : > { %p754_p9 = scmp.ne.s32.totalorder %s1021_s22, %s753_s8  ;;  %s758_s4 = scalar_lea.hbm %s1186_s1, 8192 }
  0x36   : > { %p759_p3 = scmp.lt.u32.totalorder %s1021_s22, %s1186_s1  ;;  %p760_p6 = scmp.lt.u32.totalorder %s758_s4, %s753_s8 }
  0x37   : > { %p756_p11 = pnand %p754_p9, %p725_p5  ;;  %p762_p10 = scmp.lt.u32.totalorder %s753_s8, %s1021_s22 }
  0x38   : > { %p761_p4 = por %p760_p6, %p759_p3 }
  0x39   : > { %p757_p13 = pneg %p756_p11 }
  0x3a   : > { %p763_p12 = por %p762_p10, %p761_p4 }
  0x3c   : > { %p764_p1 = pnand %p763_p12, %p757_p13 }
  0x3e   : > { %767 = shalt.err (!%p764_p1)
}
  0x3f   : > { %s768_s11 = scalar_lea.vmem %s1023_s29, 4096  ;;  %s872_s19 = smov [#allocation5]  }
  0x40   : > { %p769_p2 = scmp.ne.s32.totalorder %s1023_s29, %s768_s11  ;;  %s773_s21 = sshll.u32 %s872_s19, 4  ;;  %s774_s21 = int_to_ptr.vmem [resolvable:$false] %s773_s21 }
  0x41   : > { %s775_s23 = scalar_lea.vmem %s774_s21, 8192  ;;  %p776_p8 = scmp.lt.s32.totalorder %s1023_s29, %s774_s21 }
  0x42   : > { %p771_p9 = pnand %p769_p2, %p725_p5  ;;  %p777_p3 = scmp.lt.s32.totalorder %s775_s23, %s768_s11 }
  0x44   : > { %p772_p11 = pneg %p771_p9  ;;  %p778_p6 = por %p777_p3, %p776_p8 }
  0x46   : > { %p779_p4 = pnand %p778_p6, %p772_p11 }
  0x48   : > { %782 = shalt.err (!%p779_p4)
}
  0x49   : > { %s873_s8 = smov 128   ;;  %s874_s10 = smov 8  }
  0x4a   : > { %664 = dma.hbm_to_vmem [thread:$0]  (!%p976_p0), %s1021_s22, 4096, %s1023_s29, %s182_s6, %s873_s8, %s873_s8, %s874_s10  }
  0x4b   : > { %213 = sbr.rel (%p1012_p7) target bundleno = 349 (0x15d), region = 32  ;;  %s1054_s30 = sand.u32 (!%p1012_p7), 1, %s853_s13  }
  0x4c   : > { %s563_s4 = sshll.u32 (!%p1012_p7), %s1054_s30, 4  ;;  %s216_s5 = scalar_lea.sflag (!%p1012_p7), [#allocation3], %s1054_s30 }
  0x4d   : > { %s1060_s18 = scalar_lea.vmem (!%p1012_p7), [#allocation2], %s563_s4  ;;  %p1199_p8 = scmp.ne.s32.totalorder (!%p1012_p7), %s1192_s24, 0 }
  0x52   : > { %836 = dma.done.wait (%p1199_p8), %s216_s5, 256  }
  0x53   : > { %838 = vsyncadd (%p1199_p8), %s216_s5, 4294967040  ;;  %s564_s28 = sshll.u32 %s1054_s30, 8  ;;  %s225_s9 = scalar_lea.sflag [#allocation6], %s1054_s30 }
  0x54   : > { %s1068_s7 = scalar_lea.vmem [#allocation5], %s564_s28 }
  0x55   : > { %840 = dma.done.wait (%p1199_p8), %s225_s9, 4096  }
  0x56   : > { %842 = vsyncadd (%p1199_p8), %s225_s9, 4294963200  ;;  %v875_v0 = vmov 0.0   ;;  %vm876_vm0 = vmmov 0   ;;  %v270_v1 = vld [vmem:[%s1068_s7] sm:$0xff]  ;;  %v271_v2 = vld [vmem:[%s1068_s7 + $0x8] sm:$0xff]  ;;  %s566_s24 = sshll.u32 %s861_s15, 1 }
  0x57   : > { %612 = vmatprep.subr.bf16.mxu0 %v875_v0  ;;  %632 = vmatprep.subr.bf16.mxu1 %v875_v0  ;;  %v568_v3 = vld [vmem:[%s1068_s7 + $0x80] sm:$0xff]  ;;  %v287_v4 = vpack.c.bf16 %v271_v2, %v270_v1  ;;  %v569_v5 = vld [vmem:[%s1068_s7 + $0x88] sm:$0xff]  ;;  %v272_v6 = vld [vmem:[%s1068_s7 + $0x10] sm:$0xff]  ;;  %p263_p0 = scmp.lt.s32.totalorder %s566_s24, 3  ;;  %s593_s11 = sshll.u32 %s861_s15, 8 }
  0x58   : > { %628 = vmatprep.mubr.msk.bf16.mxu0 %vm876_vm0, %v875_v0  ;;  %648 = vmatprep.mubr.msk.bf16.mxu1 %vm876_vm0, %v875_v0  ;;  %v273_v7 = vld [vmem:[%s1068_s7 + $0x18] sm:$0xff]  ;;  %v362_v8 = vpack.c.bf16 %v569_v5, %v568_v3  ;;  %v570_v9 = vld [vmem:[%s1068_s7 + $0x90] sm:$0xff]  ;;  %v274_v13 = vld [vmem:[%s1068_s7 + $0x20] sm:$0xff]  ;;  %s259_s19 = scalar_lea.vmem [#allocation7], %s563_s4  ;;  %s1136_s10 = scalar_lea.hbm %s1188_s3, %s593_s11 }
  0x59   : > { %v571_v10 = vld [vmem:[%s1068_s7 + $0x98] sm:$0xff]  ;;  %613 = vmatpush3.bf16.msra.mxu0 %v287_v4  ;;  %v288_v11 = vpack.c.bf16 %v273_v7, %v272_v6  ;;  %v275_v14 = vld [vmem:[%s1068_s7 + $0x28] sm:$0xff]  ;;  %v572_v15 = vld [vmem:[%s1068_s7 + $0xa0] sm:$0xff]  ;;  %s1211_s24 = smov (!%p263_p0, %s566_s24), 3  ;;  %s435_s21 = sshll.u32 %s259_s19, 4  ;;  %s1138_s21 = int_to_ptr.vmem [resolvable:$true] %s435_s21 }
  0x5a   : > { %633 = vmatpush3.bf16.msra.mxu1 %v362_v8  ;;  %614 = vmatprep.subr.bf16.mxu0 %v875_v0  ;;  %v363_v12 = vpack.c.bf16 %v571_v10, %v570_v9  ;;  %v573_v16 = vld [vmem:[%s1068_s7 + $0xa8] sm:$0xff]  ;;  %v289_v17 = vpack.c.bf16 %v275_v14, %v274_v13  ;;  %v276_v19 = vld [vmem:[%s1068_s7 + $0x30] sm:$0xff]  ;;  %v277_v20 = vld [vmem:[%s1068_s7 + $0x38] sm:$0xff]  ;;  %s265_s6 = scalar_lea.vmem %s1187_s2, %s1211_s24  ;;  %s419_s15 = scalar_lea.sflag [#allocation4], %s1054_s30 }
  0x5b   : > { %634 = vmatprep.subr.bf16.mxu1 %v875_v0  ;;  %v364_v18 = vpack.c.bf16 %v573_v16, %v572_v15  ;;  %v574_v21 = vld [vmem:[%s1068_s7 + $0xb0] sm:$0xff]  ;;  %v575_v22 = vld [vmem:[%s1068_s7 + $0xb8] sm:$0xff]  ;;  %v290_v23 = vpack.c.bf16 %v277_v20, %v276_v19  ;;  %v278_v25 = vld [vmem:[%s1068_s7 + $0x40] sm:$0xff]  ;;  %s783_s4 = scalar_lea.vmem %s1138_s21, 256  ;;  %p1200_p7 = scmp.ne.s32.totalorder %s1193_s25, 0 }
  0x5c   : > { %v365_v24 = vpack.c.bf16 %v575_v22, %v574_v21  ;;  %v279_v26 = vld [vmem:[%s1068_s7 + $0x48] sm:$0xff]  ;;  %v576_v27 = vld [vmem:[%s1068_s7 + $0xc0] sm:$0xff]  ;;  %v280_v31 = vld [vmem:[%s1068_s7 + $0x50] sm:$0xff]  ;;  %p784_p5 = scmp.ne.s32.totalorder %s1138_s21, %s783_s4  ;;  %s877_s5 = smov [#allocation7]  }
  0x5d   : > { %615 = vmatpush3.bf16.msra.mxu0 %v288_v11  ;;  %v577_v28 = vld [vmem:[%s1068_s7 + $0xc8] sm:$0xff]  ;;  %v291_v29 = vpack.c.bf16 %v279_v26, %v278_v25  ;;  %v281_v32 = vld [vmem:[%s1068_s7 + $0x58] sm:$0xff]  ;;  %v578_v33 = vld [vmem:[%s1068_s7 + $0xd0] sm:$0xff] }
  0x5e   : > { %635 = vmatpush3.bf16.msra.mxu1 %v363_v12  ;;  %616 = vmatprep.subr.bf16.mxu0 %v875_v0  ;;  %v366_v30 = vpack.c.bf16 %v577_v28, %v576_v27  ;;  %v579_v34 = vld [vmem:[%s1068_s7 + $0xd8] sm:$0xff]  ;;  %v292_v35 = vpack.c.bf16 %v281_v32, %v280_v31  ;;  %v282_v37 = vld [vmem:[%s1068_s7 + $0x60] sm:$0xff]  ;;  %v283_v38 = vld [vmem:[%s1068_s7 + $0x68] sm:$0xff]  ;;  %p785_p13 = pnand %p784_p5, %p1200_p7 }
  0x5f   : > { %636 = vmatprep.subr.bf16.mxu1 %v875_v0  ;;  %v367_v36 = vpack.c.bf16 %v579_v34, %v578_v33  ;;  %v580_v39 = vld [vmem:[%s1068_s7 + $0xe0] sm:$0xff]  ;;  %v581_v40 = vld [vmem:[%s1068_s7 + $0xe8] sm:$0xff]  ;;  %v293_v41 = vpack.c.bf16 %v283_v38, %v282_v37  ;;  %v284_v43 = vld [vmem:[%s1068_s7 + $0x70] sm:$0xff] }
  0x60   : > { %v368_v42 = vpack.c.bf16 %v581_v40, %v580_v39  ;;  %v285_v44 = vld [vmem:[%s1068_s7 + $0x78] sm:$0xff]  ;;  %v582_v45 = vld [vmem:[%s1068_s7 + $0xf0] sm:$0xff]  ;;  %v567_v53 = vld [vmem:[%s265_s6] ss:$0 sm:$0xff]  ;;  %p786_p10 = pneg %p785_p13 }
  0x61   : > { %617 = vmatpush3.bf16.msra.mxu0 %v289_v17  ;;  %v583_v46 = vld [vmem:[%s1068_s7 + $0xf8] sm:$0xff]  ;;  %v294_v47 = vpack.c.bf16 %v285_v44, %v284_v43  ;;  %v269_v48 = vld [vmem:[%s1060_s18] sm:$0xff] }
  0x62   : > { %637 = vmatpush3.bf16.msra.mxu1 %v364_v18  ;;  %618 = vmatprep.subr.bf16.mxu0 %v875_v0  ;;  %v369_v49 = vpack.c.bf16 %v583_v46, %v582_v45  ;;  %v343_v50 = vld [vmem:[%s1060_s18 + $0x8] sm:$0xff]  ;;  %v286_v51 = vpack.c.bf16 %v269_v48, %v269_v48  ;;  %v584_v54 = vld [vmem:[%s265_s6 + $0x1] ss:$0 sm:$0xff]  ;;  %s787_s18 = sshll.u32 %s877_s5, 4  ;;  %s788_s18 = int_to_ptr.vmem [resolvable:$false] %s787_s18 }
  0x63   : > { %638 = vmatprep.subr.bf16.mxu1 %v875_v0  ;;  %v361_v52 = vpack.c.bf16 %v343_v50, %v343_v50  ;;  %s789_s28 = scalar_lea.vmem %s788_s18, 512  ;;  %p790_p12 = scmp.lt.s32.totalorder %s1138_s21, %s788_s18 }
  0x64   : > { %p791_p1 = scmp.lt.s32.totalorder %s789_s28, %s783_s4 }
  0x65   : > { %619 = vmatpush3.bf16.msra.mxu0 %v290_v23 }
  0x66   : > { %639 = vmatpush3.bf16.msra.mxu1 %v365_v24  ;;  %620 = vmatprep.subr.bf16.mxu0 %v875_v0  ;;  %p792_p2 = por %p791_p1, %p790_p12 }
  0x67   : > { %640 = vmatprep.subr.bf16.mxu1 %v875_v0 }
  0x68   : > { %p793_p9 = pnand %p792_p2, %p786_p10 }
  0x69   : > { %621 = vmatpush3.bf16.msra.mxu0 %v291_v29 }
  0x6a   : > { %641 = vmatpush3.bf16.msra.mxu1 %v366_v30  ;;  %622 = vmatprep.subr.bf16.mxu0 %v875_v0 }
  0x6b   : > { %642 = vmatprep.subr.bf16.mxu1 %v875_v0 }
  0x6d   : > { %623 = vmatpush3.bf16.msra.mxu0 %v292_v35 }
  0x6e   : > { %643 = vmatpush3.bf16.msra.mxu1 %v367_v36  ;;  %624 = vmatprep.subr.bf16.mxu0 %v875_v0 }
  0x6f   : > { %644 = vmatprep.subr.bf16.mxu1 %v875_v0 }
  0x71   : > { %625 = vmatpush3.bf16.msra.mxu0 %v293_v41 }
  0x72   : > { %645 = vmatpush3.bf16.msra.mxu1 %v368_v42  ;;  %626 = vmatprep.subr.bf16.mxu0 %v875_v0 }
  0x73   : > { %646 = vmatprep.subr.bf16.mxu1 %v875_v0 }
  0x75   : > { %627 = vmatpush3.bf16.msra.mxu0 %v294_v47 }
  0x76   : > { %647 = vmatpush3.bf16.msra.mxu1 %v369_v49 }
  0x78   : > { %629 = vmatmul.mubr.bf16.vlgmr.msra.gmra.mrb[0].mxu0 %v286_v51 }
  0x79   : > { %649 = vmatmul.mubr.bf16.vlgmr.msra.gmra.mrb[0].mxu1 %v361_v52 }
 0x14b   : > { %v336_v55 = vpop.f32.mrb[0].mxu0 }
 0x14c   : > { %v337_v56 = vadd.f32 %v567_v53, %v336_v55  ;;  %v411_v57 = vpop.f32.mrb[0].mxu1  ;;  %v630_v58 = vpop.f32.mrb[1].mxu0 }
 0x14d   : > { %v412_v59 = vadd.f32 %v584_v54, %v411_v57  ;;  %v650_v60 = vpop.f32.mrb[1].mxu1  ;;  %v339_v61 = vpop.f32.mrb[2].mxu0 }
 0x14e   : > { %342 = vst [vmem:[%s259_s19] sm:$0xff] %v337_v56  ;;  %v414_v62 = vpop.f32.mrb[2].mxu1  ;;  %v631_v63 = vpop.f32.mrb[3].mxu0 }
 0x14f   : > { %417 = vst [vmem:[%s259_s19 + $0x8] sm:$0xff] %v412_v59  ;;  %v651_v0 = vpop.f32.mrb[3].mxu1 }
 0x150   : > { %796 = shalt.err (!%p793_p9)
}
 0x151   : > { %s797_s30 = scalar_lea.hbm %s1136_s10, 256  ;;  %s801_s24 = scalar_lea.hbm %s1188_s3, 512 }
 0x152   : > { %p798_p11 = scmp.ne.s32.totalorder %s1136_s10, %s797_s30  ;;  %p802_p4 = scmp.lt.u32.totalorder %s1136_s10, %s1188_s3 }
 0x153   : > { %p803_p8 = scmp.lt.u32.totalorder %s801_s24, %s797_s30  ;;  %p805_p5 = scmp.lt.u32.totalorder %s797_s30, %s1136_s10 }
 0x154   : > { %p799_p3 = pnand %p798_p11, %p1200_p7 }
 0x155   : > { %p804_p0 = por %p803_p8, %p802_p4 }
 0x156   : > { %p800_p6 = pneg %p799_p3 }
 0x157   : > { %p806_p13 = por %p805_p5, %p804_p0 }
 0x159   : > { %p807_p10 = pnand %p806_p13, %p800_p6 }
 0x15b   : > { %810 = shalt.err (!%p807_p10)
}
 0x15c   : > { %656 = dma.vmem_to_hbm [thread:$0]  (%p1200_p7), %s1138_s21, 256, %s1136_s10, %s419_s15  }
 0x15d PF: > { %s447_s6 = sand.u32 1, %s849_s12   ;;  %p1201_p12 = scmp.ne.s32.totalorder %s1194_s27, 0 }
 0x15e   : > { %p1202_p1 = scmp.ge.s32.totalorder %s869_s17, 2  ;;  %s448_s11 = scalar_lea.sflag [#allocation4], %s447_s6 }
 0x160   : > { %p666_p2 = pnand %p1202_p1, %p1201_p12 }
 0x162   : > { %844 = dma.done.wait (!%p666_p2), %s448_s11, 256  }
 0x163   : > { %846 = vsyncadd (!%p666_p2), %s448_s11, 4294967040  ;;  %s22_s17 = sadd.s32 1, %s869_s17   ;;  %s1203_s12 = smov %s853_s13 }
 0x164   : > { %p19_p9 = scmp.ge.s32.totalorder %s22_s17, 4   ;;  %s1204_s13 = smov %s857_s14 }
 0x165   : > { %s1205_s14 = smov %s954_s26  ;;  %s1206_s15 = smov %s865_s16 }
 0x166   : > { %s1207_s16 = smov %s1209_s20  ;;  %21 = sbr.rel (!%p19_p9) target bundleno = 8 (0x8), region = 94 }
 0x16d   :  { %453 = vsyncpa [#allocation3], 1 }
 0x16e   :  { %455 = vsyncpa [#allocation3 + $0x1], 1 }
 0x16f   :  { %456 = vsyncpa [#allocation6], 1 }
 0x170   :  { %458 = vsyncpa [#allocation6 + $0x1], 1 }
 0x171   :  { %459 = vsyncpa [#allocation4], 1 }
 0x172   :  { %461 = vsyncpa [#allocation4 + $0x1], 1 }

</bundles_post_ra>
